<compile_context>
chip_gen: v7x
topology: tpu7x:2x2x1
jax: 0.10.0
libtpu: 0.0.40
codegen_flags: <defaults>
</compile_context>

<pallas_src>
import functools

import jax
import jax.numpy as jnp
from jax.experimental import pallas as pl
from jax.experimental.pallas import tpu as pltpu


def _round_up(x, m):
    return (x + m - 1) // m * m


def _cdiv(a, b):
    return (a + b - 1) // b


def _vmem_capacity_bytes():
    try:
        return int(pltpu.get_tpu_info().vmem_capacity_bytes)
    except Exception:
        return 64 << 20   # conservative fallback (v7x per-core VMEM)


# ----------------------------- Pallas kernels ------------------------------ #

def router_logits_kernel(x_ref, wr_ref, o_ref):
    # x: (TN, Dp) f32, wr: (E_rpad, Dp) f32  ->  logits: (TN, E_rpad) f32.
    # E_rpad is a multiple of 128 so the store is lane-dense.
    o_ref[...] = jax.lax.dot_general(
        x_ref[...], wr_ref[...],
        (((1,), (1,)), ((), ())),
        preferred_element_type=jnp.float32)


def moe_expert_kernel(active_ref,    # SMEM (n_tiles, E) int32 (scalar prefetch)
                      emap_ref,      # SMEM (n_tiles, E) int32 (scalar prefetch)
                      x_ref,         # (TN, Dp)    bf16
                      w1_ref,        # (1, TH, Dp) bf16   up-proj chunk (SiLU branch)
                      wg_ref,        # (1, TH, Dp) bf16   up-proj chunk (gate branch)
                      wo_ref,        # (1, Dp, TH) bf16   down-proj chunk
                      gate_ref,      # (1, TN, 1)  f32    per-expert gate column
                      bias_ref,      # (1, Dp)     f32
                      o_ref,         # (TN, Dp)    f32
                      acc_ref):      # VMEM scratch (TN, Dp) f32
    del emap_ref  # only consumed by the index_maps (weight DMA skip)
    t = pl.program_id(0)
    e = pl.program_id(1)
    h = pl.program_id(2)

    @pl.when((e == 0) & (h == 0))
    def _():
        acc_ref[...] = jnp.zeros_like(acc_ref)

    # Skip (token tile, expert) pairs with no routed tokens: their gates are
    # exactly 0 by construction, so skipping is numerically identical. The
    # matching emap-based weight index_maps make the pipeline also skip the
    # weight DMA for these steps (block index unchanged from the previous step).
    @pl.when(active_ref[t, e] > 0)
    def _():
        dims = (((1,), (1,)), ((), ()))               # contract last dims, no .T
        x = x_ref[...]                                                      # bf16
        h1 = jax.lax.dot_general(x, w1_ref[0], dims,
                                 preferred_element_type=jnp.float32)        # (TN, TH)
        g = jax.lax.dot_general(x, wg_ref[0], dims,
                                preferred_element_type=jnp.float32)         # (TN, TH)
        a = (jax.nn.silu(h1) * g).astype(jnp.bfloat16)                      # (TN, TH)
        y_e = jax.lax.dot_general(a, wo_ref[0], dims,
                                  preferred_element_type=jnp.float32)       # (TN, Dp)
        acc_ref[...] += gate_ref[0] * y_e

    @pl.when((e == pl.num_programs(1) - 1) & (h == pl.num_programs(2) - 1))
    def _():
        o_ref[...] = (acc_ref[...] + bias_ref[...]).astype(o_ref.dtype)


# ------------------------------- Wrapper ----------------------------------- #

@functools.partial(jax.jit, static_argnames=("top_k", "token_tile", "h_chunk"))
def moe_forward(x, w_router, w_in, w_out, bias, *, top_k, token_tile=512,
                h_chunk=1024):
    """x: (bsz, length, D). Returns (y: (bsz, length, D) float32, loss=0.0)."""
    bsz, length, D = x.shape
    N = bsz * length
    E, twoH, _ = w_in.shape
    H = twoH // 2
    top_k = min(top_k, E)

    # Lane-dense feature dims: pad D and H to multiples of 128 with zeros (exact:
    # padded columns contribute 0 to every contraction / activation product).
    Dp = _round_up(D, 128)
    Hp = _round_up(H, 128)

    # Token tile: multiple of 16 (bf16 sublane packing). Prefer >= 2 token tiles
    # so both v7x TensorCores get work when the token count allows it.
    TN = _round_up(min(token_tile, N), 16)
    if _cdiv(N, TN) < 2 and N > 16:
        TN = _round_up(_cdiv(N, 2), 16)

    # Hidden chunk (third grid axis) so big experts fit v7x's 64 MiB VMEM.
    TH = min(_round_up(h_chunk, 128), Hp)

    # VMEM budget: double-buffered input/output blocks + resident accumulator
    # + the in-kernel f32 temporaries (h1, g, GLU product, y_e).
    def _budget(tn, th):
        return (2 * tn * Dp * 2             # x tile (bf16)
                + 2 * 2 * th * Dp * 2       # W1 + Wg chunks (bf16)
                + 2 * Dp * th * 2           # W_out chunk (bf16)
                + 2 * tn * 128 * 4          # gate column (f32, lane-padded)
                + 2 * 8 * Dp * 4            # bias (f32, sublane-padded)
                + 2 * tn * Dp * 4           # output tile (f32)
                + tn * Dp * 4               # accumulator scratch (f32)
                + 2 * tn * th * 4           # h1, g temporaries (f32)
                + tn * th * 2               # silu(h1)*g (bf16)
                + tn * Dp * 4)              # y_e temporary (f32)

    vmem_cap = _vmem_capacity_bytes()                 # 64 MiB v7x / 128 MiB v5e,v6e
    usable = max(vmem_cap - (16 << 20), 16 << 20)
    while _budget(TN, TH) > usable and TH > 128:
        TH = max(128, TH // 2)
    while _budget(TN, TH) > usable and TN > 16:
        TN = max(16, _round_up(TN // 2, 16))
    vmem_bytes = int(max(min(_budget(TN, TH) + (4 << 20), usable),
                         min(32 << 20, usable)))

    Hp2 = _round_up(Hp, TH)
    n_hc = Hp2 // TH
    N_pad = _round_up(N, TN)
    n_tiles = N_pad // TN

    # --- padded token matrix (f32 for the router, bf16 for the expert MXU) ---
    x_flat = x.reshape(N, D).astype(jnp.float32)
    x_pad = jnp.zeros((N_pad, Dp), jnp.float32).at[:N, :D].set(x_flat)
    x_bf = x_pad.astype(jnp.bfloat16)
    # Router kept on f32 x so near-tie top-k selections match the f32 reference;
    # for a bf16 production model, feed x_bf here and drop the f32 copy.

    # --- router logits (Pallas, token-tiled, lane-padded expert dim) ---
    E_rpad = _round_up(max(E, 128), 128)
    wr_pad = jnp.zeros((E_rpad, Dp), jnp.float32).at[:E, :D].set(
        w_router.astype(jnp.float32))
    logits_pad = pl.pallas_call(
        router_logits_kernel,
        out_shape=jax.ShapeDtypeStruct((N_pad, E_rpad), jnp.float32),
        grid=(n_tiles,),
        in_specs=[pl.BlockSpec((TN, Dp), lambda t: (t, 0)),
                  pl.BlockSpec((E_rpad, Dp), lambda t: (0, 0))],
        out_specs=pl.BlockSpec((TN, E_rpad), lambda t: (t, 0)),
        compiler_params=pltpu.CompilerParams(dimension_semantics=("parallel",)),
    )(x_pad, wr_pad)
    logits = logits_pad[:N, :E]

    # --- top-k gating (tiny glue in plain JAX) ---
    top_logits, top_idx = jax.lax.top_k(logits, top_k)
    top_gates = jax.nn.softmax(top_logits, axis=-1).astype(jnp.float32)
    dense = jnp.zeros((N, E), jnp.float32).at[
        jnp.arange(N)[:, None], top_idx].set(top_gates)
    dense_pad = jnp.zeros((N_pad, E), jnp.float32).at[:N].set(dense)

    # Per-expert gate columns for the kernel: (E, N_pad, 1).
    gates_et = dense_pad.T.reshape(E, N_pad, 1)

    # Per-(token tile, expert) activity + remapped expert ids (scalar prefetch):
    #   active[t, e]: gates the MXU compute (pl.when).
    #   emap[t, e]:   weight block index for the index_maps. Inactive experts
    #                 repeat the previously fetched active expert's id, so the
    #                 pipeline sees an unchanged block index and skips the DMA.
    active = (dense_pad > 0).reshape(n_tiles, TN, E).any(axis=1)        # (n_tiles, E)
    idx = jnp.arange(E, dtype=jnp.int32)[None, :]
    ffill = jax.lax.cummax(jnp.where(active, idx, -1), axis=1)          # forward fill
    first_active = jnp.argmax(active, axis=1).astype(jnp.int32)         # backfill head
    emap = jnp.where(ffill >= 0, ffill, first_active[:, None]).astype(jnp.int32)
    active_i32 = active.astype(jnp.int32)

    # --- expert operands: bf16 MXU inputs, zero-padded lane-dense shapes ---
    w1p = jnp.zeros((E, Hp2, Dp), jnp.bfloat16).at[:, :H, :D].set(
        w_in[:, :H, :].astype(jnp.bfloat16))          # SiLU branch of the GLU up-proj
    wgp = jnp.zeros((E, Hp2, Dp), jnp.bfloat16).at[:, :H, :D].set(
        w_in[:, H:, :].astype(jnp.bfloat16))          # gate branch of the GLU up-proj
    wop = jnp.zeros((E, Dp, Hp2), jnp.bfloat16).at[:, :D, :H].set(
        w_out.astype(jnp.bfloat16))
    bias2d = jnp.zeros((1, Dp), jnp.float32).at[0, :D].set(bias.astype(jnp.float32))

    y_pad = pl.pallas_call(
        moe_expert_kernel,
        out_shape=jax.ShapeDtypeStruct((N_pad, Dp), jnp.float32),
        grid_spec=pltpu.PrefetchScalarGridSpec(
            num_scalar_prefetch=2,
            grid=(n_tiles, E, n_hc),
            in_specs=[
                pl.BlockSpec((TN, Dp), lambda t, e, h, a, m: (t, 0)),         # x
                pl.BlockSpec((1, TH, Dp), lambda t, e, h, a, m: (m[t, e], h, 0)),  # W1
                pl.BlockSpec((1, TH, Dp), lambda t, e, h, a, m: (m[t, e], h, 0)),  # Wg
                pl.BlockSpec((1, Dp, TH), lambda t, e, h, a, m: (m[t, e], 0, h)),  # Wo
                pl.BlockSpec((1, TN, 1), lambda t, e, h, a, m: (m[t, e], t, 0)),   # gate
                pl.BlockSpec((1, Dp), lambda t, e, h, a, m: (0, 0)),          # bias
            ],
            out_specs=pl.BlockSpec((TN, Dp), lambda t, e, h, a, m: (t, 0)),
            scratch_shapes=[pltpu.VMEM((TN, Dp), jnp.float32)],
        ),
        compiler_params=pltpu.CompilerParams(
            dimension_semantics=("parallel", "arbitrary", "arbitrary"),
            vmem_limit_bytes=vmem_bytes),
    )(active_i32, emap, x_bf, w1p, wgp, wop, gates_et, bias2d)

    y = y_pad[:N, :D].reshape(bsz, length, D)
    # eval mode: router.loss == 0
    # TODO(synk): training-time auxiliary (switch + z) loss not implemented.
    # TODO(synk): sorted-by-expert grouped matmul would stream each expert's
    #             weights once per contiguous token group, removing the remaining
    #             per-tile re-stream (and the duplicated weight stream when the
    #             token axis is megacore-sharded across two TensorCores).
    # TODO(synk): optional fp8 expert weights (v7x MXU) with per-expert scales
    #             if still HBM-bound after grouped routing; needs accuracy eval.
    return y, 0.0


# ------------------------- pure-JAX reference ------------------------------ #

def moe_reference(x, w_router, w_in, w_out, bias, top_k):
    bsz, length, D = x.shape
    xf = x.reshape(-1, D).astype(jnp.float32)
    logits = (xf @ w_router.T).astype(jnp.float32)
    tl, ti = jax.lax.top_k(logits, top_k)
    tg = jax.nn.softmax(tl, axis=-1)
    y = jnp.zeros_like(xf)
    H = w_in.shape[1] // 2
    for j in range(top_k):
        e = ti[:, j]
        h = jnp.einsum('nd,nhd->nh', xf, w_in[e])
        h1, g = h[:, :H], h[:, H:]
        a = jax.nn.silu(h1) * g
        ye = jnp.einsum('nh,ndh->nd', a, w_out[e])
        y = y + tg[:, j:j + 1] * ye
    y = y + bias[None, :]
    return y.reshape(bsz, length, D)


# --------------------------------- main ------------------------------------ #

if __name__ == "__main__":
    # small config consistent with MoE(input_size, hidden_size, num_experts, top_k, ...)
    bsz, length = 2, 8
    input_size = 32          # emb_size
    hidden_size = 64         # expert hidden (GLU -> up-proj is 2*hidden)
    num_experts = 8
    top_k = 2

    key = jax.random.PRNGKey(0)
    k1, k2, k3, k4 = jax.random.split(key, 4)

    x = jax.random.normal(k1, (bsz, length, input_size), dtype=jnp.float32)
    w_router = jax.random.normal(k2, (num_experts, input_size), jnp.float32) * 0.1
    # scattermoe ParallelExperts weights follow nn.Linear convention: [out, in]
    w_in = jax.random.normal(
        k3, (num_experts, 2 * hidden_size, input_size), jnp.float32) * 0.1
    w_out = jax.random.normal(
        k4, (num_experts, input_size, hidden_size), jnp.float32) * 0.1
    bias = jnp.zeros((input_size,), jnp.float32)   # torch.nn.init.zeros_

    y, loss = moe_forward(x, w_router, w_in, w_out, bias, top_k=top_k)
    y = jax.block_until_ready(y)

    y_ref = moe_reference(x, w_router, w_in, w_out, bias, top_k)
    assert y.shape == (bsz, length, input_size)
    # bf16 MXU operands in the kernel vs f32 reference -> relaxed tolerance.
    assert jnp.allclose(y, y_ref, atol=2e-2, rtol=2e-2), "mismatch vs reference"

    print("KERNEL_OK")
</pallas_src>

<mosaic_0001>
module attributes {stable_mosaic.version = 11 : i64} {
  func.func @router_logits_kernel(%arg0: i32, %arg1: memref<16x128xf32, #tpu.memory_space<vmem>>, %arg2: memref<128x128xf32, #tpu.memory_space<vmem>>, %arg3: memref<16x128xf32, #tpu.memory_space<vmem>>) attributes {dimension_semantics = [#tpu.dimension_semantics<parallel>], iteration_bounds = array<i64: 1>, scalar_prefetch = 0 : i64, scratch_operands = 0 : i64, tpu.core_type = #tpu.core_type<tc>, window_params = [{transform_indices = @transform_0, window_bounds = array<i64: 16, 128>}, {pipeline_mode = #tpu.pipeline_mode<synchronous>, transform_indices = @transform_1, window_bounds = array<i64: 128, 128>}, {transform_indices = @transform_2, window_bounds = array<i64: 16, 128>}]} {
    %c0 = arith.constant 0 : index
    %c0_0 = arith.constant 0 : index
    %0 = vector.load %arg1[%c0, %c0_0] : memref<16x128xf32, #tpu.memory_space<vmem>>, vector<16x128xf32>
    %c0_1 = arith.constant 0 : index
    %c0_2 = arith.constant 0 : index
    %1 = vector.load %arg2[%c0_1, %c0_2] : memref<128x128xf32, #tpu.memory_space<vmem>>, vector<128x128xf32>
    %cst = arith.constant dense<0.000000e+00> : vector<16x128xf32>
    %2 = tpu.matmul %0, %1, %cst {dimension_numbers = #tpu.dot_dimension_numbers<[1], [1], [0], [0], [0, 0, 1, 0], [], []>} : vector<16x128xf32>, vector<128x128xf32>, vector<16x128xf32> -> vector<16x128xf32>
    %c0_3 = arith.constant 0 : index
    %c0_4 = arith.constant 0 : index
    %3 = vector.load %arg3[%c0_3, %c0_4] : memref<16x128xf32, #tpu.memory_space<vmem>>, vector<16x128xf32>
    tpu.vector_store %arg3[%c0_3, %c0_4], %2 {strides = array<i32>} : memref<16x128xf32, #tpu.memory_space<vmem>>, vector<16x128xf32>,
    return
  }
  func.func @transform_0(%arg0: i32) -> (i32, i32) {
    %c0_i32 = arith.constant 0 : i32
    %c0_i32_0 = arith.constant 0 : i32
    return %arg0, %c0_i32 : i32, i32
  }
  func.func @transform_1(%arg0: i32) -> (i32, i32) {
    %c0_i32 = arith.constant 0 : i32
    %c0_i32_0 = arith.constant 0 : i32
    %c0_i32_1 = arith.constant 0 : i32
    return %c0_i32, %c0_i32_0 : i32, i32
  }
  func.func @transform_2(%arg0: i32) -> (i32, i32) {
    %c0_i32 = arith.constant 0 : i32
    %c0_i32_0 = arith.constant 0 : i32
    return %arg0, %c0_i32 : i32, i32
  }
}

module attributes {stable_mosaic.version = 11 : i64} {
  func.func @moe_expert_kernel(%arg0: i32, %arg1: i32, %arg2: i32, %arg3: memref<1x8xi32, #tpu.memory_space<smem>>, %arg4: memref<1x8xi32, #tpu.memory_space<smem>>, %arg5: memref<16x128xbf16, #tpu.memory_space<vmem>>, %arg6: memref<1x128x128xbf16, #tpu.memory_space<vmem>>, %arg7: memref<1x128x128xbf16, #tpu.memory_space<vmem>>, %arg8: memref<1x128x128xbf16, #tpu.memory_space<vmem>>, %arg9: memref<1x16x1xf32, #tpu.memory_space<vmem>>, %arg10: memref<1x128xf32, #tpu.memory_space<vmem>>, %arg11: memref<16x128xf32, #tpu.memory_space<vmem>>, %arg12: memref<16x128xf32, #tpu.memory_space<vmem>>) attributes {dimension_semantics = [#tpu.dimension_semantics<parallel>, #tpu.dimension_semantics<arbitrary>, #tpu.dimension_semantics<arbitrary>], iteration_bounds = array<i64: 1, 8, 1>, scalar_prefetch = 2 : i64, scratch_operands = 1 : i64, tpu.core_type = #tpu.core_type<tc>, window_params = [{transform_indices = @transform_0, window_bounds = array<i64: 16, 128>}, {transform_indices = @transform_1, window_bounds = array<i64: 1, 128, 128>}, {transform_indices = @transform_2, window_bounds = array<i64: 1, 128, 128>}, {transform_indices = @transform_3, window_bounds = array<i64: 1, 128, 128>}, {transform_indices = @transform_4, window_bounds = array<i64: 1, 16, 1>}, {pipeline_mode = #tpu.pipeline_mode<synchronous>, transform_indices = @transform_5, window_bounds = array<i64: 1, 128>}, {transform_indices = @transform_6, window_bounds = array<i64: 16, 128>}]} {
    %c0_i32 = arith.constant 0 : i32
    %0 = arith.cmpi eq, %arg1, %c0_i32 : i32
    %c0_i32_0 = arith.constant 0 : i32
    %1 = arith.cmpi eq, %arg2, %c0_i32_0 : i32
    %2 = arith.andi %0, %1 : i1
    %3 = arith.extui %2 : i1 to i32
    %c0_i32_1 = arith.constant 0 : i32
    %4 = arith.cmpi ne, %3, %c0_i32_1 : i32
    scf.if %4 {
      %cst = arith.constant 0.000000e+00 : f32
      %16 = vector.broadcast %cst : f32 to vector<16x128xf32>
      %c0 = arith.constant 0 : index
      %c0_6 = arith.constant 0 : index
      %17 = vector.load %arg12[%c0, %c0_6] : memref<16x128xf32, #tpu.memory_space<vmem>>, vector<16x128xf32>
      tpu.vector_store %arg12[%c0, %c0_6], %16 {strides = array<i32>} : memref<16x128xf32, #tpu.memory_space<vmem>>, vector<16x128xf32>,
    } else {
    }
    %5 = arith.index_cast %arg0 : i32 to index
    %6 = arith.index_cast %arg1 : i32 to index
    %7 = memref.load %arg3[%5, %6] : memref<1x8xi32, #tpu.memory_space<smem>>
    %c0_i32_2 = arith.constant 0 : i32
    %8 = arith.cmpi sgt, %7, %c0_i32_2 : i32
    %9 = arith.extui %8 : i1 to i32
    %c0_i32_3 = arith.constant 0 : i32
    %10 = arith.cmpi ne, %9, %c0_i32_3 : i32
    scf.if %10 {
      %c0 = arith.constant 0 : index
      %c0_6 = arith.constant 0 : index
      %16 = vector.load %arg5[%c0, %c0_6] : memref<16x128xbf16, #tpu.memory_space<vmem>>, vector<16x128xbf16>
      %c0_7 = arith.constant 0 : index
      %c0_8 = arith.constant 0 : index
      %c0_9 = arith.constant 0 : index
      %17 = vector.load %arg6[%c0_7, %c0_8, %c0_9] : memref<1x128x128xbf16, #tpu.memory_space<vmem>>, vector<1x128x128xbf16>
      %18 = vector.shape_cast %17 : vector<1x128x128xbf16> to vector<128x128xbf16>
      %cst = arith.constant dense<0.000000e+00> : vector<16x128xf32>
      %19 = tpu.matmul %16, %18, %cst {dimension_numbers = #tpu.dot_dimension_numbers<[1], [1], [0], [0], [0, 0, 1, 0], [], []>} : vector<16x128xbf16>, vector<128x128xbf16>, vector<16x128xf32> -> vector<16x128xf32>
      %c0_10 = arith.constant 0 : index
      %c0_11 = arith.constant 0 : index
      %c0_12 = arith.constant 0 : index
      %20 = vector.load %arg7[%c0_10, %c0_11, %c0_12] : memref<1x128x128xbf16, #tpu.memory_space<vmem>>, vector<1x128x128xbf16>
      %21 = vector.shape_cast %20 : vector<1x128x128xbf16> to vector<128x128xbf16>
      %cst_13 = arith.constant dense<0.000000e+00> : vector<16x128xf32>
      %22 = tpu.matmul %16, %21, %cst_13 {dimension_numbers = #tpu.dot_dimension_numbers<[1], [1], [0], [0], [0, 0, 1, 0], [], []>} : vector<16x128xbf16>, vector<128x128xbf16>, vector<16x128xf32> -> vector<16x128xf32>
      %23 = arith.negf %19 : vector<16x128xf32>
      %24 = math.exp %23 : vector<16x128xf32>
      %cst_14 = arith.constant 1.000000e+00 : f32
      %25 = vector.broadcast %cst_14 : f32 to vector<16x128xf32>
      %26 = arith.addf %25, %24 : vector<16x128xf32>
      %27 = arith.divf %25, %26 : vector<16x128xf32>
      %28 = arith.mulf %19, %27 : vector<16x128xf32>
      %29 = arith.mulf %28, %22 : vector<16x128xf32>
      %30 = arith.truncf %29 : vector<16x128xf32> to vector<16x128xbf16>
      %c0_15 = arith.constant 0 : index
      %c0_16 = arith.constant 0 : index
      %c0_17 = arith.constant 0 : index
      %31 = vector.load %arg8[%c0_15, %c0_16, %c0_17] : memref<1x128x128xbf16, #tpu.memory_space<vmem>>, vector<1x128x128xbf16>
      %32 = vector.shape_cast %31 : vector<1x128x128xbf16> to vector<128x128xbf16>
      %cst_18 = arith.constant dense<0.000000e+00> : vector<16x128xf32>
      %33 = tpu.matmul %30, %32, %cst_18 {dimension_numbers = #tpu.dot_dimension_numbers<[1], [1], [0], [0], [0, 0, 1, 0], [], []>} : vector<16x128xbf16>, vector<128x128xbf16>, vector<16x128xf32> -> vector<16x128xf32>
      %c0_19 = arith.constant 0 : index
      %c0_20 = arith.constant 0 : index
      %34 = vector.load %arg12[%c0_19, %c0_20] : memref<16x128xf32, #tpu.memory_space<vmem>>, vector<16x128xf32>
      %c0_21 = arith.constant 0 : index
      %c0_22 = arith.constant 0 : index
      %c0_23 = arith.constant 0 : index
      %35 = vector.load %arg9[%c0_21, %c0_22, %c0_23] : memref<1x16x1xf32, #tpu.memory_space<vmem>>, vector<1x16x1xf32>
      %36 = vector.shape_cast %35 : vector<1x16x1xf32> to vector<16x1xf32>
      %37 = vector.broadcast %36 : vector<16x1xf32> to vector<16x128xf32>
      %38 = arith.mulf %37, %33 : vector<16x128xf32>
      %39 = arith.addf %34, %38 : vector<16x128xf32>
      %c0_24 = arith.constant 0 : index
      %c0_25 = arith.constant 0 : index
      %40 = vector.load %arg12[%c0_24, %c0_25] : memref<16x128xf32, #tpu.memory_space<vmem>>, vector<16x128xf32>
      tpu.vector_store %arg12[%c0_24, %c0_25], %39 {strides = array<i32>} : memref<16x128xf32, #tpu.memory_space<vmem>>, vector<16x128xf32>,
    } else {
    }
    %c7_i32 = arith.constant 7 : i32
    %11 = arith.cmpi eq, %arg1, %c7_i32 : i32
    %c0_i32_4 = arith.constant 0 : i32
    %12 = arith.cmpi eq, %arg2, %c0_i32_4 : i32
    %13 = arith.andi %11, %12 : i1
    %14 = arith.extui %13 : i1 to i32
    %c0_i32_5 = arith.constant 0 : i32
    %15 = arith.cmpi ne, %14, %c0_i32_5 : i32
    scf.if %15 {
      %c0 = arith.constant 0 : index
      %c0_6 = arith.constant 0 : index
      %16 = vector.load %arg12[%c0, %c0_6] : memref<16x128xf32, #tpu.memory_space<vmem>>, vector<16x128xf32>
      %c0_7 = arith.constant 0 : index
      %c0_8 = arith.constant 0 : index
      %17 = vector.load %arg10[%c0_7, %c0_8] : memref<1x128xf32, #tpu.memory_space<vmem>>, vector<1x128xf32>
      %18 = vector.broadcast %17 : vector<1x128xf32> to vector<16x128xf32>
      %19 = arith.addf %16, %18 : vector<16x128xf32>
      %c0_9 = arith.constant 0 : index
      %c0_10 = arith.constant 0 : index
      %20 = vector.load %arg11[%c0_9, %c0_10] : memref<16x128xf32, #tpu.memory_space<vmem>>, vector<16x128xf32>
      tpu.vector_store %arg11[%c0_9, %c0_10], %19 {strides = array<i32>} : memref<16x128xf32, #tpu.memory_space<vmem>>, vector<16x128xf32>,
    } else {
    }
    return
  }
  func.func @transform_0(%arg0: i32, %arg1: i32, %arg2: i32, %arg3: memref<1x8xi32, #tpu.memory_space<smem>>, %arg4: memref<1x8xi32, #tpu.memory_space<smem>>) -> (i32, i32) {
    %c0_i32 = arith.constant 0 : i32
    %c0_i32_0 = arith.constant 0 : i32
    return %arg0, %c0_i32 : i32, i32
  }
  func.func @transform_1(%arg0: i32, %arg1: i32, %arg2: i32, %arg3: memref<1x8xi32, #tpu.memory_space<smem>>, %arg4: memref<1x8xi32, #tpu.memory_space<smem>>) -> (i32, i32, i32) {
    %0 = arith.index_cast %arg0 : i32 to index
    %1 = arith.index_cast %arg1 : i32 to index
    %2 = memref.load %arg4[%0, %1] : memref<1x8xi32, #tpu.memory_space<smem>>
    %c0_i32 = arith.constant 0 : i32
    %c0_i32_0 = arith.constant 0 : i32
    return %2, %arg2, %c0_i32 : i32, i32, i32
  }
  func.func @transform_2(%arg0: i32, %arg1: i32, %arg2: i32, %arg3: memref<1x8xi32, #tpu.memory_space<smem>>, %arg4: memref<1x8xi32, #tpu.memory_space<smem>>) -> (i32, i32, i32) {
    %0 = arith.index_cast %arg0 : i32 to index
    %1 = arith.index_cast %arg1 : i32 to index
    %2 = memref.load %arg4[%0, %1] : memref<1x8xi32, #tpu.memory_space<smem>>
    %c0_i32 = arith.constant 0 : i32
    %c0_i32_0 = arith.constant 0 : i32
    return %2, %arg2, %c0_i32 : i32, i32, i32
  }
  func.func @transform_3(%arg0: i32, %arg1: i32, %arg2: i32, %arg3: memref<1x8xi32, #tpu.memory_space<smem>>, %arg4: memref<1x8xi32, #tpu.memory_space<smem>>) -> (i32, i32, i32) {
    %0 = arith.index_cast %arg0 : i32 to index
    %1 = arith.index_cast %arg1 : i32 to index
    %2 = memref.load %arg4[%0, %1] : memref<1x8xi32, #tpu.memory_space<smem>>
    %c0_i32 = arith.constant 0 : i32
    %c0_i32_0 = arith.constant 0 : i32
    return %2, %c0_i32, %arg2 : i32, i32, i32
  }
  func.func @transform_4(%arg0: i32, %arg1: i32, %arg2: i32, %arg3: memref<1x8xi32, #tpu.memory_space<smem>>, %arg4: memref<1x8xi32, #tpu.memory_space<smem>>) -> (i32, i32, i32) {
    %0 = arith.index_cast %arg0 : i32 to index
    %1 = arith.index_cast %arg1 : i32 to index
    %2 = memref.load %arg4[%0, %1] : memref<1x8xi32, #tpu.memory_space<smem>>
    %c0_i32 = arith.constant 0 : i32
    %c0_i32_0 = arith.constant 0 : i32
    return %2, %arg0, %c0_i32 : i32, i32, i32
  }
  func.func @transform_5(%arg0: i32, %arg1: i32, %arg2: i32, %arg3: memref<1x8xi32, #tpu.memory_space<smem>>, %arg4: memref<1x8xi32, #tpu.memory_space<smem>>) -> (i32, i32) {
    %c0_i32 = arith.constant 0 : i32
    %c0_i32_0 = arith.constant 0 : i32
    %c0_i32_1 = arith.constant 0 : i32
    return %c0_i32, %c0_i32_0 : i32, i32
  }
  func.func @transform_6(%arg0: i32, %arg1: i32, %arg2: i32, %arg3: memref<1x8xi32, #tpu.memory_space<smem>>, %arg4: memref<1x8xi32, #tpu.memory_space<smem>>) -> (i32, i32) {
    %c0_i32 = arith.constant 0 : i32
    %c0_i32_0 = arith.constant 0 : i32
    return %arg0, %c0_i32 : i32, i32
  }
}

</mosaic_0001>

<bundles_post_ra>
// kernel: moe_forward.2
= control target key start
LH: loop header
LB: loop body
LE: loop exit
PB: predicated region body
PF: predicated region fallthrough
CT: control target
= control target key end

     0   :  { %s270_s1 = inlined_call_operand.vmem [shape: f32[128,128], index: 1, kind: input, shape index: {}]   ;;  %s271_s0 = inlined_call_operand.vmem [shape: f32[16,128], index: 0, kind: input, shape index: {}]   ;;  %s272_s2 = inlined_call_operand.vmem [shape: f32[16,128], index: 2, kind: output, shape index: {}]  }
   0x1   :  { %v13_v0 = vld [vmem:[%s270_s1] sm:$0xff]  ;;  %v14_v1 = vld [vmem:[%s270_s1 + $0x8] sm:$0xff]  ;;  %v15_v2 = vld [vmem:[%s270_s1 + $0x10] sm:$0xff] }
   0x2   :  { %v163_v3 = vpack.c.bf16 %v14_v1, %v13_v0  ;;  %v16_v4 = vld [vmem:[%s270_s1 + $0x18] sm:$0xff]  ;;  %v11_v6 = vld [vmem:[%s271_s0] sm:$0xff]  ;;  %v18_v8 = vld [vmem:[%s270_s1 + $0x28] sm:$0xff] }
   0x3   :  { %v167_v5 = vpack.c.bf16 %v16_v4, %v15_v2  ;;  %v17_v7 = vld [vmem:[%s270_s1 + $0x20] sm:$0xff]  ;;  %160 = vmatprep.mubr.f32.mxu0 %v11_v6  ;;  %v19_v10 = vld [vmem:[%s270_s1 + $0x30] sm:$0xff]  ;;  %v20_v11 = vld [vmem:[%s270_s1 + $0x38] sm:$0xff] }
   0x4   :  { %164 = vmatprep.subr.bf16.mxu0 %v163_v3  ;;  %v171_v9 = vpack.c.bf16 %v18_v8, %v17_v7  ;;  %v175_v12 = vpack.c.bf16 %v20_v11, %v19_v10  ;;  %v21_v13 = vld [vmem:[%s270_s1 + $0x40] sm:$0xff]  ;;  %v22_v14 = vld [vmem:[%s270_s1 + $0x48] sm:$0xff]  ;;  %v23_v16 = vld [vmem:[%s270_s1 + $0x50] sm:$0xff] }
   0x5   :  { %166 = vmatpush3.bf16.xpose.msra.mxu0 %v163_v3  ;;  %v179_v15 = vpack.c.bf16 %v22_v14, %v21_v13  ;;  %v24_v17 = vld [vmem:[%s270_s1 + $0x58] sm:$0xff]  ;;  %v25_v19 = vld [vmem:[%s270_s1 + $0x60] sm:$0xff]  ;;  %v26_v20 = vld [vmem:[%s270_s1 + $0x68] sm:$0xff] }
   0x6   :  { %168 = vmatprep.subr.bf16.mxu0 %v167_v5  ;;  %v183_v18 = vpack.c.bf16 %v24_v17, %v23_v16  ;;  %v187_v21 = vpack.c.bf16 %v26_v20, %v25_v19  ;;  %v27_v22 = vld [vmem:[%s270_s1 + $0x70] sm:$0xff]  ;;  %v28_v23 = vld [vmem:[%s270_s1 + $0x78] sm:$0xff]  ;;  %v12_v25 = vld [vmem:[%s271_s0 + $0x8] sm:$0xff] }
   0x7   :  { %v191_v24 = vpack.c.bf16 %v28_v23, %v27_v22 }
   0xd   :  { %170 = vmatpush3.bf16.xpose.msra.mxu0 %v167_v5 }
   0xe   :  { %172 = vmatprep.subr.bf16.mxu0 %v171_v9 }
  0x15   :  { %174 = vmatpush3.bf16.xpose.msra.mxu0 %v171_v9 }
  0x16   :  { %176 = vmatprep.subr.bf16.mxu0 %v175_v12 }
  0x1d   :  { %178 = vmatpush3.bf16.xpose.msra.mxu0 %v175_v12 }
  0x1e   :  { %180 = vmatprep.subr.bf16.mxu0 %v179_v15 }
  0x25   :  { %182 = vmatpush3.bf16.xpose.msra.mxu0 %v179_v15 }
  0x26   :  { %184 = vmatprep.subr.bf16.mxu0 %v183_v18 }
  0x2d   :  { %186 = vmatpush3.bf16.xpose.msra.mxu0 %v183_v18 }
  0x2e   :  { %188 = vmatprep.subr.bf16.mxu0 %v187_v21 }
  0x35   :  { %190 = vmatpush3.bf16.xpose.msra.mxu0 %v187_v21 }
  0x36   :  { %192 = vmatprep.subr.bf16.mxu0 %v191_v24 }
  0x3d   :  { %194 = vmatpush3.bf16.xpose.msra.mxu0 %v191_v24 }
  0x44   :  { %161 = vmatmul.mubr.f32.vlgmr.msra.gmra.mrb[0].mxu0 %v12_v25 }
 0x117   :  { %v162_v26 = vpop.f32.mrb[0].mxu0 }
 0x118   :  { %105 = vst [vmem:[%s272_s2 + $0x8] sm:$0xff] %v162_v26  ;;  %v95_v27 = vpop.f32.mrb[1].mxu0 }
 0x119   :  { %104 = vst [vmem:[%s272_s2] sm:$0xff] %v95_v27 }

// kernel: moe_forward.3
= control target key start
LH: loop header
LB: loop body
LE: loop exit
PB: predicated region body
PF: predicated region fallthrough
CT: control target
= control target key end

     0   :  { %s1636_s0 = inlined_call_operand.vmem [shape: s32[1,8], index: 0, kind: input, shape index: {}]   ;;  %s1637_s2 = inlined_call_operand.vmem [shape: bf16[16,128], index: 2, kind: input, shape index: {}]   ;;  %s1638_s3 = inlined_call_operand.vmem [shape: bf16[8,128,128], index: 3, kind: input, shape index: {}]   ;;  %s1639_s4 = inlined_call_operand.vmem [shape: bf16[8,128,128], index: 4, kind: input, shape index: {}]   ;;  %s1640_s5 = inlined_call_operand.vmem [shape: bf16[8,128,128], index: 5, kind: input, shape index: {}]   ;;  %s1641_s6 = inlined_call_operand.vmem [shape: f32[8,16,1], index: 6, kind: input, shape index: {}]   ;;  %s1642_s7 = inlined_call_operand.vmem [shape: f32[1,128], index: 7, kind: input, shape index: {}]   ;;  %s1643_s8 = inlined_call_operand.vmem [shape: f32[16,128], index: 8, kind: output, shape index: {}]   ;;  %s1644_s1 = inlined_call_operand.vmem [shape: s32[1,8], index: 1, kind: input, shape index: {}]  }
   0x1   :  { %s13_s29 = sshll.u32 %s1636_s0, 4  ;;  %s17_s10 = sshll.u32 %s1644_s1, 4  ;;  %s14_s29 = int_to_ptr.vmem [resolvable:$true] %s13_s29  ;;  %s18_s10 = int_to_ptr.vmem [resolvable:$true] %s17_s10 }
   0x2   :  { %s1406_s11 = scalar_lea.vmem %s14_s29, 16  ;;  %p1411_p1 = scmp.lt.s32.totalorder %s14_s29, %s14_s29 }
   0x3   :  { %p1407_p0 = scmp.ne.s32.totalorder %s14_s29, %s1406_s11  ;;  %p1412_p2 = scmp.lt.s32.totalorder %s1406_s11, %s1406_s11 }
   0x5   :  { %p1413_p3 = por %p1412_p2, %p1411_p1 }
   0x7   :  { %p1414_p4 = pnand %p1413_p3, %p1407_p0 }
   0x9   :  { %1417 = shalt.err (!%p1414_p4)  }
   0xa   :  { %s1456_s12 = smov [#allocation4]   ;;  %s1418_s13 = scalar_lea.vmem %s18_s10, 16 }
   0xb   :  { %16 = dma.vmem_to_smem %s14_s29, 16, %s1456_s12, [#allocation3] }
   0xc   :  { %p1419_p5 = scmp.ne.s32.totalorder %s18_s10, %s1418_s13  ;;  %p1423_p6 = scmp.lt.s32.totalorder %s18_s10, %s18_s10 }
   0xd   :  { %p1424_p7 = scmp.lt.s32.totalorder %s1418_s13, %s1418_s13 }
   0xf   :  { %p1425_p8 = por %p1424_p7, %p1423_p6 }
  0x11   :  { %p1426_p9 = pnand %p1425_p8, %p1419_p5 }
  0x13   :  { %1429 = shalt.err (!%p1426_p9)  }
  0x14   :  { %s1457_s0 = smov [#allocation5]  }
  0x15   :  { %20 = dma.vmem_to_smem %s18_s10, 16, %s1457_s0, [#allocation3] }
  0x16   :  { %1442 = dma.done.wait [#allocation3], 32 }
  0x17   :  { %1443 = vsyncadd [#allocation3], 4294967264 }
  0x18   :  { %22 = sfence }
  0x19   :  { %s1513_s1 = smov 0   ;;  %s1515_s14 = smov 0  }
  0x1a   :  { %s1517_s15 = smov 0  }
  0x1b LB: > { %s43_s16 = sadd.s32 1, %s1450_s14  ;;  %p1200_p10 = scmp.ge.s32.totalorder %s1454_s15, 1  ;;  %s1454_s15 = sphi %s1517_s15, %s28_s15   ;;  %s1450_s14 = sphi %s1515_s14, %s1646_s14   ;;  %s1446_s1 = sphi %s1513_s1, %s1645_s1  }
  0x1c   : > { %p45_p11 = scmp.ge.s32.totalorder %s43_s16, 8  ;;  %p438_p12 = scmp.lt.s32.totalorder %s1454_s15, 9 }
  0x1e   : > { %s1648_s16 = smov (%p45_p11, %s43_s16), 0  ;;  %p439_p13 = pnand %p1200_p10, %p438_p12 }
  0x1f   : > { %s541_s17 = sshra.s32 (!%p439_p13), %s1446_s1, 7  ;;  %s546_s18 = sand.u32 (!%p439_p13), 127, %s1446_s1 }
  0x20   : > { %442 = sbr.rel (%p439_p13) target bundleno = 603 (0x25b), region = 44  ;;  %s1201_s19 = sshll.u32 (!%p439_p13), %s541_s17, 7 }
  0x21   : > { %p650_p0 = scmp.eq.s32.totalorder (!%p439_p13), %s1446_s1, 0  ;;  %s547_s20 = sadd.s32 (!%p439_p13), %s1201_s19, %s546_s18 }
  0x22   : > { %s548_s21 = sld [smem:[#allocation5 + %s547_s20]] (!%p439_p13) }
  0x23   : > { %s574_s22 = sld [smem:[#allocation5 + %s547_s20]] (!%p439_p13) }
  0x24   : > { %s600_s23 = sld [smem:[#allocation5 + %s547_s20]] (!%p439_p13) }
  0x25   : > { %s624_s24 = sld [smem:[#allocation5 + %s547_s20]] (!%p439_p13) }
  0x27   : > { %v1458_v0 = vmov (%p650_p0), 0.0  }
  0x28   : > { %p550_p1 = scmp.lt.s32.totalorder %s548_s21, 7  ;;  %656 = vst [vmem:[#allocation2] sm:$0xff] (%p650_p0), %v1458_v0  ;;  %657 = vst [vmem:[#allocation2 + $0x8] sm:$0xff] (%p650_p0), %v1458_v0 }
  0x29   : > { %p576_p2 = scmp.lt.s32.totalorder %s574_s22, 7 }
  0x2a   : > { %p601_p3 = scmp.lt.s32.totalorder %s600_s23, 7  ;;  %s1650_s21 = smov (!%p550_p1, %s548_s21), 7 }
  0x2b   : > { %s1652_s22 = smov (!%p576_p2, %s574_s22), 7  ;;  %s1249_s25 = sshll.u32 %s1650_s21, 6 }
  0x2c   : > { %p626_p4 = scmp.lt.s32.totalorder %s624_s24, 7  ;;  %s1539_s28 = scalar_lea.vmem %s1638_s3, %s1249_s25 }
  0x2d   : > { %s1250_s29 = sshll.u32 %s1652_s22, 6  ;;  %s1654_s23 = smov (!%p601_p3, %s600_s23), 7 }
  0x2e   : > { %s1544_s10 = scalar_lea.vmem %s1639_s4, %s1250_s29  ;;  %s1656_s24 = smov (!%p626_p4, %s624_s24), 7 }
  0x2f   : > { %s1251_s11 = sshll.u32 %s1654_s23, 6  ;;  %s1252_s17 = sshll.u32 %s1656_s24, 4 }
  0x30   : > { %s1549_s0 = scalar_lea.vmem %s1640_s5, %s1251_s11  ;;  %s1554_s21 = scalar_lea.vmem %s1641_s6, %s1252_s17 }
  0x31   : > { %655 = sbr.rel (!%p650_p0) target bundleno = 56 (0x38), region = 48 }
  0x38 PF: > { %s665_s22 = sld [smem:[#allocation4 + %s547_s20]] }
  0x3e   : > { %p1215_p5 = scmp.le.s32.totalorder %s665_s22, 0 }
  0x3f   : > { %v1373_v1 = vld [vmem:[%s1539_s28] sm:$0xff] (!%p1215_p5)   ;;  %v1459_v2 = vmov (!%p1215_p5), 0.0   ;;  %vm1460_vm0 = vmmov (!%p1215_p5), 0   ;;  %v1374_v4 = vld [vmem:[%s1539_s28 + $0x8] sm:$0xff] (!%p1215_p5)   ;;  %v1375_v6 = vld [vmem:[%s1539_s28 + $0x10] sm:$0xff] (!%p1215_p5)   ;;  %v1461_v28 = vmov (!%p1215_p5), 0  }
  0x40   : > { %669 = sbr.rel (%p1215_p5) target bundleno = 593 (0x251), region = 52  ;;  %1282 = vmatprep.subr.bf16.mxu0 (!%p1215_p5), %v1459_v2  ;;  %1302 = vmatprep.subr.bf16.mxu1 (!%p1215_p5), %v1459_v2  ;;  %v1377_v3 = vld [vmem:[%s1544_s10] sm:$0xff] (!%p1215_p5)   ;;  %v1379_v5 = vld [vmem:[%s1544_s10 + $0x8] sm:$0xff] (!%p1215_p5)   ;;  %v1381_v7 = vld [vmem:[%s1544_s10 + $0x10] sm:$0xff] (!%p1215_p5)  }
  0x41   : > { %1283 = vmatpush3.bf16.xpose.msra.mxu0 (!%p1215_p5), %v1373_v1  ;;  %1298 = vmatprep.mubr.msk.bf16.mxu0 (!%p1215_p5), %vm1460_vm0, %v1459_v2  ;;  %v1376_v8 = vld [vmem:[%s1539_s28 + $0x18] sm:$0xff] (!%p1215_p5)   ;;  %v1378_v10 = vld [vmem:[%s1539_s28 + $0x20] sm:$0xff] (!%p1215_p5)   ;;  %v1380_v12 = vld [vmem:[%s1539_s28 + $0x28] sm:$0xff] (!%p1215_p5)  }
  0x42   : > { %1284 = vmatprep.subr.bf16.mxu0 (!%p1215_p5), %v1459_v2  ;;  %1318 = vmatprep.mubr.msk.bf16.mxu1 (!%p1215_p5), %vm1460_vm0, %v1459_v2  ;;  %v1383_v9 = vld [vmem:[%s1544_s10 + $0x18] sm:$0xff] (!%p1215_p5)   ;;  %v1385_v11 = vld [vmem:[%s1544_s10 + $0x20] sm:$0xff] (!%p1215_p5)   ;;  %v1387_v13 = vld [vmem:[%s1544_s10 + $0x28] sm:$0xff] (!%p1215_p5)  }
  0x43   : > { %1303 = vmatpush3.bf16.xpose.msra.mxu1 (!%p1215_p5), %v1377_v3  ;;  %v1382_v14 = vld [vmem:[%s1539_s28 + $0x30] sm:$0xff] (!%p1215_p5)   ;;  %v1384_v16 = vld [vmem:[%s1539_s28 + $0x38] sm:$0xff] (!%p1215_p5)   ;;  %v1386_v18 = vld [vmem:[%s1637_s2] sm:$0xff] (!%p1215_p5)   ;;  %1372 = vset.pattern.permute.xlu0 (!%p1215_p5), %v1461_v28 }
  0x44   : > { %1304 = vmatprep.subr.bf16.mxu1 (!%p1215_p5), %v1459_v2  ;;  %v1388_v15 = vld [vmem:[%s1544_s10 + $0x30] sm:$0xff] (!%p1215_p5)   ;;  %v1389_v17 = vld [vmem:[%s1544_s10 + $0x38] sm:$0xff] (!%p1215_p5)   ;;  %v1390_v19 = vld [vmem:[%s1549_s0] sm:$0xff] (!%p1215_p5)  }
  0x45   : > { %v1391_v20 = vld [vmem:[%s1549_s0 + $0x8] sm:$0xff] (!%p1215_p5)   ;;  %v1392_v21 = vld [vmem:[%s1549_s0 + $0x10] sm:$0xff] (!%p1215_p5)   ;;  %v1393_v22 = vld [vmem:[%s1549_s0 + $0x18] sm:$0xff] (!%p1215_p5)  }
  0x46   : > { %v1394_v23 = vld [vmem:[%s1549_s0 + $0x20] sm:$0xff] (!%p1215_p5)   ;;  %v1395_v24 = vld [vmem:[%s1549_s0 + $0x28] sm:$0xff] (!%p1215_p5)   ;;  %v1396_v25 = vld [vmem:[%s1549_s0 + $0x30] sm:$0xff] (!%p1215_p5)  }
  0x47   : > { %v1397_v26 = vld [vmem:[%s1549_s0 + $0x38] sm:$0xff]   ;;  %v1012_v27 = vld [vmem:[%s1554_s21] sm:$0xff]  ;;  %v1013_v29 = vld [vmem:[%s1554_s21 + $0x8] sm:$0xff] }
  0x48   : > { %1016 = vperm.xlu0 %1372, %v1012_v27   ;;  %v1010_v53 = vld [vmem:[#allocation2] sm:$0xff]  ;;  %v1011_v58 = vld [vmem:[#allocation2 + $0x8] sm:$0xff] }
  0x49   : > { %1285 = vmatpush3.bf16.xpose.msra.mxu0 %v1374_v4 }
  0x4a   : > { %1286 = vmatprep.subr.bf16.mxu0 %v1459_v2 }
  0x4b   : > { %1305 = vmatpush3.bf16.xpose.msra.mxu1 %v1379_v5 }
  0x4c   : > { %1306 = vmatprep.subr.bf16.mxu1 %v1459_v2  ;;  %1021 = vperm.xlu0 %1372, %v1013_v29  }
  0x51   : > { %1287 = vmatpush3.bf16.xpose.msra.mxu0 %v1375_v6 }
  0x52   : > { %1288 = vmatprep.subr.bf16.mxu0 %v1459_v2 }
  0x53   : > { %1307 = vmatpush3.bf16.xpose.msra.mxu1 %v1381_v7 }
  0x54   : > { %1308 = vmatprep.subr.bf16.mxu1 %v1459_v2 }
  0x59   : > { %1289 = vmatpush3.bf16.xpose.msra.mxu0 %v1376_v8 }
  0x5a   : > { %1290 = vmatprep.subr.bf16.mxu0 %v1459_v2 }
  0x5b   : > { %1309 = vmatpush3.bf16.xpose.msra.mxu1 %v1383_v9 }
  0x5c   : > { %1310 = vmatprep.subr.bf16.mxu1 %v1459_v2 }
  0x61   : > { %1291 = vmatpush3.bf16.xpose.msra.mxu0 %v1378_v10 }
  0x62   : > { %1292 = vmatprep.subr.bf16.mxu0 %v1459_v2 }
  0x63   : > { %1311 = vmatpush3.bf16.xpose.msra.mxu1 %v1385_v11 }
  0x64   : > { %1312 = vmatprep.subr.bf16.mxu1 %v1459_v2 }
  0x69   : > { %1293 = vmatpush3.bf16.xpose.msra.mxu0 %v1380_v12 }
  0x6a   : > { %1294 = vmatprep.subr.bf16.mxu0 %v1459_v2 }
  0x6b   : > { %1313 = vmatpush3.bf16.xpose.msra.mxu1 %v1387_v13 }
  0x6c   : > { %1314 = vmatprep.subr.bf16.mxu1 %v1459_v2 }
  0x71   : > { %1295 = vmatpush3.bf16.xpose.msra.mxu0 %v1382_v14 }
  0x72   : > { %1296 = vmatprep.subr.bf16.mxu0 %v1459_v2 }
  0x73   : > { %1315 = vmatpush3.bf16.xpose.msra.mxu1 %v1388_v15 }
  0x74   : > { %1316 = vmatprep.subr.bf16.mxu1 %v1459_v2 }
  0x79   : > { %1297 = vmatpush3.bf16.xpose.msra.mxu0 %v1384_v16 }
  0x7a   : > { %1322 = vmatprep.subr.bf16.mxu0 %v1459_v2 }
  0x7b   : > { %1317 = vmatpush3.bf16.xpose.msra.mxu1 %v1389_v17 }
  0x80   : > { %1299 = vmatmul.mubr.bf16.vlgmr.msra.gmra.mrb[0].mxu0 %v1386_v18 }
  0x81   : > { %1323 = vmatpush3.bf16.xpose.msra.mxu0 %v1390_v19  ;;  %1338 = vmatprep.mubr.msk.bf16.mxu0 %vm1460_vm0, %v1459_v2 }
  0x82   : > { %1324 = vmatprep.subr.bf16.mxu0 %v1459_v2  ;;  %1319 = vmatmul.mubr.bf16.vlgmr.msra.gmra.mrb[0].mxu1 %v1386_v18 }
  0x89   : > { %1325 = vmatpush3.bf16.xpose.msra.mxu0 %v1391_v20 }
  0x8a   : > { %1326 = vmatprep.subr.bf16.mxu0 %v1459_v2 }
  0x91   : > { %1327 = vmatpush3.bf16.xpose.msra.mxu0 %v1392_v21 }
  0x92   : > { %1328 = vmatprep.subr.bf16.mxu0 %v1459_v2 }
  0x99   : > { %1329 = vmatpush3.bf16.xpose.msra.mxu0 %v1393_v22 }
  0x9a   : > { %1330 = vmatprep.subr.bf16.mxu0 %v1459_v2 }
  0xa1   : > { %1331 = vmatpush3.bf16.xpose.msra.mxu0 %v1394_v23 }
  0xa2   : > { %1332 = vmatprep.subr.bf16.mxu0 %v1459_v2 }
  0xa9   : > { %1333 = vmatpush3.bf16.xpose.msra.mxu0 %v1395_v24 }
  0xaa   : > { %1334 = vmatprep.subr.bf16.mxu0 %v1459_v2 }
  0xb1   : > { %1335 = vmatpush3.bf16.xpose.msra.mxu0 %v1396_v25 }
  0xb2   : > { %1336 = vmatprep.subr.bf16.mxu0 %v1459_v2 }
  0xb9   : > { %1337 = vmatpush3.bf16.xpose.msra.mxu0 %v1397_v26 }
  0xc7   : > { %v1017_v51 = vpop.permute.xlu0 %1016 }
  0xcb   : > { %v1022_v56 = vpop.permute.xlu0 %1021 }
 0x153   : > { %v776_v30 = vpop.f32.mrb[0].mxu0 }
 0x154   : > { %v1233_v31 = vmul.f32 -1.442695, %v776_v30  ;;  %v1300_v32 = vpop.f32.mrb[1].mxu0 }
 0x155   : > { %v779_v33 = vpop.f32.mrb[2].mxu0  ;;  %v881_v36 = vpop.f32.mrb[0].mxu1 }
 0x156   : > { %1398 = vpow2.f32 %v1233_v31  ;;  %v1234_v34 = vmul.f32 -1.442695, %v779_v33  ;;  %v1301_v35 = vpop.f32.mrb[3].mxu0  ;;  %v1320_v37 = vpop.f32.mrb[1].mxu1 }
 0x157   : > { %v884_v38 = vpop.f32.mrb[2].mxu1 }
 0x158   : > { %1400 = vpow2.f32 %v1234_v34  ;;  %v1321_v39 = vpop.f32.mrb[3].mxu1 }
 0x160   : > { %v1399_v40 = vpop.eup %1398 }
 0x161   : > { %v894_v41 = vadd.f32 1.0, %v1399_v40 }
 0x162   : > { %v1401_v42 = vpop.eup %1400 }
 0x163   : > { %1402 = vrcp.f32 %v894_v41  ;;  %v895_v43 = vadd.f32 1.0, %v1401_v42 }
 0x165   : > { %1404 = vrcp.f32 %v895_v43 }
 0x16d   : > { %v1403_v44 = vpop.eup %1402 }
 0x16e   : > { %v900_v45 = vmul.f32 %v1403_v44, %v776_v30 }
 0x16f   : > { %v1405_v46 = vpop.eup %1404 }
 0x170   : > { %v901_v47 = vmul.f32 %v1405_v46, %v779_v33  ;;  %v902_v48 = vmul.f32 %v900_v45, %v881_v36 }
 0x172   : > { %v903_v49 = vmul.f32 %v901_v47, %v884_v38 }
 0x174   : > { %v904_v50 = vpack.c.bf16 %v903_v49, %v902_v48 }
 0x176   : > { %1339 = vmatmul.mubr.bf16.vlgmr.msra.gmra.mrb[4].mxu0 %v904_v50 }
 0x249   : > { %v1003_v52 = vpop.f32.mrb[4].mxu0 }
 0x24a   : > { %v1024_v54 = vmul.f32 %v1017_v51, %v1003_v52  ;;  %v1340_v55 = vpop.f32.mrb[5].mxu0 }
 0x24b   : > { %v1006_v57 = vpop.f32.mrb[6].mxu0 }
 0x24c   : > { %v1026_v59 = vadd.f32 %v1024_v54, %v1010_v53  ;;  %v1025_v60 = vmul.f32 %v1022_v56, %v1006_v57  ;;  %v1341_v61 = vpop.f32.mrb[7].mxu0 }
 0x24e   : > { %1028 = vst [vmem:[#allocation2] sm:$0xff] %v1026_v59  ;;  %v1027_v62 = vadd.f32 %v1025_v60, %v1011_v58 }
 0x250   : > { %1029 = vst [vmem:[#allocation2 + $0x8] sm:$0xff] %v1027_v62 }
 0x251 PF: > { %p1030_p6 = scmp.eq.s32.totalorder %s1446_s1, 7 }
 0x252   : > { %v1244_v0 = vld [vmem:[%s1642_s7] ss:$0 sm:$0xff] (%p1030_p6) }
 0x253   : > { %1034 = sbr.rel (!%p1030_p6) target bundleno = 603 (0x25b), region = 56 }
 0x255   : > { %v1035_v63 = vld [vmem:[#allocation2] sm:$0xff] (%p1030_p6) }
 0x256   : > { %v1044_v2 = vadd.f32 (%p1030_p6), %v1244_v0, %v1035_v63 }
 0x257   : > { %v1036_v1 = vld [vmem:[#allocation2 + $0x8] sm:$0xff] (%p1030_p6) }
 0x258   : > { %v1045_v3 = vadd.f32 (%p1030_p6), %v1244_v0, %v1036_v1  ;;  %1046 = vst [vmem:[%s1643_s8] sm:$0xff] (%p1030_p6), %v1044_v2 }
 0x25a   : > { %1047 = vst [vmem:[%s1643_s8 + $0x8] sm:$0xff] %v1045_v3 }
 0x25b PF: > { %s28_s15 = sadd.s32 1, %s1454_s15   ;;  %s1645_s1 = smov %s1450_s14 }
 0x25c   : > { %p25_p7 = scmp.ge.s32.totalorder %s28_s15, 10   ;;  %s1646_s14 = smov %s1648_s16 }
 0x25e   :  { %27 = sbr.rel (!%p25_p7) target bundleno = 27 (0x1b), region = 98 }

</bundles_post_ra>
